<compile_context>
chip_gen: v7x
topology: tpu7x:2x2x1
jax: 0.10.0
libtpu: 0.0.40
codegen_flags: <defaults>
</compile_context>

<pallas_src>
import jax
import jax.numpy as jnp
from jax.experimental import pallas as pl
from jax.experimental.pallas import tpu as pltpu


# ------------------------------------------------------------- kernel body

def make_merger_kernel(num_layers, V, Bt, Pt, H, act_dtype):
    """Kernel body for a fixed layer count / tile shape.

    Refs: occ, W0, b0, [W_top, W_bot, b]*(L-1), fc_w, fc_b(SMEM), out
    """

    def mxu_dot(a, w):
        # Cast the LHS to the weight dtype (no-op when already matching);
        # accumulate in f32 on the MXU.
        return jnp.dot(a.astype(w.dtype), w, preferred_element_type=jnp.float32)

    def kernel(*refs):
        occ_ref = refs[0]                      # (Bt, V, Pt, H)
        out_ref = refs[-1]                     # (Bt, Pt)
        params = refs[1:-1]

        w0 = params[0][...]                    # (H, H)   matmul dtype
        b0 = params[1][...]                    # (1, H)   f32
        fc_w = params[-2][...]                 # (1, H)   f32
        fc_b = params[-1][0]                   # scalar (SMEM)

        L = num_layers
        R = Bt * V * Pt                        # rows of the full (B*V*P) slab
        Rp = Bt * Pt                           # rows of the pooled slab

        # ---- layer 0: Linear(H -> H) on relu(occ) ----
        h = jnp.maximum(occ_ref[...], 0.0).reshape(R, H)
        top = mxu_dot(h, w0)                                  # (R, H) f32

        if L == 1:
            # Last layer: bias is V-invariant -> pool first, add bias after,
            # never materializing the (Bt,V,Pt,H) slab.
            pooled = jnp.max(top.reshape(Bt, V, Pt, H), axis=1) + b0
            hp = jnp.maximum(pooled, 0.0)                     # (Bt, Pt, H) f32
            h4 = None
        else:
            net4 = (top.reshape(Bt, V, Pt, H) + b0).astype(act_dtype)
            h4 = jnp.maximum(net4, 0.0)                       # relu(net), reused
            hp = jnp.max(h4, axis=1)                          # == relu(pooled)

        # ---- layers 1..L-1:
        #   relu(cat(net, bcast(pooled))) @ W + b
        #   == relu(net) @ W_top + bcast(relu(pooled) @ W_bot) + b   (exact) ----
        for l in range(1, L):
            wt = params[2 + 3 * (l - 1)][...]                 # (H, H)
            wb = params[3 + 3 * (l - 1)][...]                 # (H, H)
            bl = params[4 + 3 * (l - 1)][...]                 # (1, H) f32

            top = mxu_dot(h4.reshape(R, H), wt)               # (R, H)  f32
            bot = mxu_dot(hp.reshape(Rp, H), wb)              # (Rp, H) f32

            if l < L - 1:
                net4 = (top.reshape(Bt, V, Pt, H)
                        + (bot.reshape(Bt, 1, Pt, H) + bl)).astype(act_dtype)
                h4 = jnp.maximum(net4, 0.0)                   # relu(net), reused
                hp = jnp.max(h4, axis=1)                      # == relu(pooled)
            else:
                # Last layer: bot / bias are V-invariant -> pool the top term
                # only and never materialize the full (Bt,V,Pt,H) slab.
                pooled = (jnp.max(top.reshape(Bt, V, Pt, H), axis=1)
                          + bot.reshape(Bt, Pt, H) + bl)      # (Bt, Pt, H) f32
                hp = jnp.maximum(pooled, 0.0)

        # ---- fc_out on relu(pooled): VPU multiply + lane reduction (an N=1
        # matmul would waste the MXU); lane-dense (Bt, Pt) store. ----
        out = jnp.sum(hp.astype(jnp.float32) * fc_w.reshape(1, 1, H), axis=-1) + fc_b
        out_ref[...] = out.astype(out_ref.dtype)

    return kernel


# ------------------------------------------------ hardware-aware tile sizing

def _vmem_capacity_bytes():
    try:
        return int(pltpu.get_tpu_info().vmem_capacity_bytes)
    except Exception:
        pass
    try:
        kind = jax.devices()[0].device_kind.lower()
        if "v7" in kind:
            return 64 << 20
    except Exception:
        pass
    return 128 << 20


def _has_bf16_vpu():
    # v5e (and older) have no bf16 VPU; keep the big elementwise chain in f32
    # there, bf16 on v6e / v7x.
    try:
        kind = jax.devices()[0].device_kind.lower()
        return not any(g in kind for g in ("v2", "v3", "v4", "v5"))
    except Exception:
        return True


def _vmem_budget():
    cap = _vmem_capacity_bytes()
    if cap <= (64 << 20):                    # v7x-class: leave >= 12 MiB headroom
        return cap - (12 << 20)
    return min(cap - (16 << 20), 112 << 20)  # 128 MiB parts: actually use them


def _estimate_vmem_bytes(Bt, Pt, V, H, L, occ_bytes, act_bytes, param_bytes):
    R = Bt * V * Pt
    Rp = Bt * Pt
    occ_tile = 2 * Bt * V * Pt * H * occ_bytes            # double-buffered input
    out_tile = 2 * Bt * Pt * 4                             # double-buffered output
    weights = 2 * (((2 * L - 1) * H * H + (L + 1) * H) * param_bytes + 128)
    # Live activation slabs: one f32 MXU-output slab + one act-dtype relu slab
    # (R-sized), plus a handful of Rp-sized f32 slabs (pooled / bot / epilogue).
    acts = R * H * (4 + act_bytes) + 4 * Rp * H * 4
    return int(1.25 * (occ_tile + out_tile + weights + acts))


def _bt_candidates(B):
    # (Bt, Pt) output block puts Bt on the sublane axis: Bt must be a multiple
    # of 8 or the full batch. Smallest first (Bt=8 preferred -> more grid steps).
    cands = [b for b in range(8, B, 8) if B % b == 0]
    return cands + [B]


def _pt_candidates(P):
    # Pt must be a multiple of 128 or the full dim; Pt == P first (contiguous
    # per-batch DMA).
    cands = [P]
    p = (P // 128) * 128
    while p >= 128:
        if p != P and P % p == 0:
            cands.append(p)
        p -= 128
    return cands


def _pick_tiles(B, V, P, H, L, occ_bytes, act_bytes, param_bytes, budget):
    bt_cands = _bt_candidates(B)
    pt_cands = _pt_candidates(P)

    Bt = Pt = None
    for pt in pt_cands:                      # prefer Pt == P; shrink P only if forced
        for bt in bt_cands:                  # smallest valid Bt first
            if _estimate_vmem_bytes(bt, pt, V, H, L, occ_bytes, act_bytes,
                                    param_bytes) <= budget:
                Bt, Pt = bt, pt
                break
        if Bt is not None:
            break
    if Bt is None:                           # nothing fits the estimate: go minimal
        Bt, Pt = bt_cands[0], pt_cands[-1]

    # Give the software pipeline (and the v7x second TensorCore) a few grid
    # steps to work with when the problem size allows it.
    def steps(bt, pt):
        return (B // bt) * (P // pt)

    while steps(Bt, Pt) < 4:
        smaller_bts = [b for b in range(8, Bt, 8) if B % b == 0]
        if smaller_bts:
            Bt = smaller_bts[-1]
        elif Pt % 256 == 0:
            Pt //= 2
        else:
            break
    return Bt, Pt


# ---------------------------------------------------------------- wrappers

def prepare_params(Ws, bs, fc_w, fc_b, *, use_bf16=False):
    """One-time parameter prep: split each (2H, H) middle-layer weight into
    W_top (net rows) / W_bot (pooled rows), reshape biases, and cast matmul
    operands, so the kernel / per-call wrapper does no slicing or casting."""
    H = Ws[0].shape[0]
    pdt = jnp.bfloat16 if use_bf16 else jnp.float32
    params = [Ws[0].astype(pdt), bs[0].reshape(1, H).astype(jnp.float32)]
    for l in range(1, len(Ws)):
        params += [Ws[l][:H].astype(pdt),            # multiplies net
                   Ws[l][H:].astype(pdt),            # multiplies pooled
                   bs[l].reshape(1, H).astype(jnp.float32)]
    params += [fc_w.reshape(1, H).astype(jnp.float32),
               fc_b.reshape(1).astype(jnp.float32)]
    return params


def merger_forward(occ, params, *, use_bf16=False, bt=None, pt=None,
                   act_bf16=None):
    """Pallas-backed forward. occ: (B, V, P, H). params: prepare_params(...).
    Returns (B, P) float32. On the bf16 path, pass occ already in bf16 to
    halve the input DMA (the wrapper casts if needed)."""
    B, V, P, H = occ.shape
    L = (len(params) - 1) // 3
    assert len(params) == 3 * L + 1

    in_dtype = jnp.bfloat16 if use_bf16 else jnp.float32
    if occ.dtype != in_dtype:
        occ = occ.astype(in_dtype)
    if act_bf16 is None:
        act_bf16 = use_bf16 and _has_bf16_vpu()
    act_dtype = jnp.bfloat16 if act_bf16 else jnp.float32

    occ_bytes = jnp.dtype(in_dtype).itemsize
    act_bytes = jnp.dtype(act_dtype).itemsize
    param_bytes = 2 if use_bf16 else 4
    budget = _vmem_budget()

    if bt is not None or pt is not None:
        Bt = bt if bt is not None else (_bt_candidates(B)[0])
        Pt = pt if pt is not None else P
        assert B % Bt == 0, (B, Bt)
        assert P % Pt == 0, (P, Pt)
        assert Bt == B or Bt % 8 == 0, Bt
        assert Pt == P or Pt % 128 == 0, Pt
    else:
        Bt, Pt = _pick_tiles(B, V, P, H, L, occ_bytes, act_bytes, param_bytes,
                             budget)
    grid = (B // Bt, P // Pt)

    const = lambda bi, pi: (0, 0)
    args = [occ]
    in_specs = [pl.BlockSpec((Bt, V, Pt, H), lambda bi, pi: (bi, 0, pi, 0))]
    # W0, b0, [W_top, W_bot, b]*(L-1), fc_w: constant index maps -> stay
    # VMEM-resident across all grid steps.
    for p in params[:-1]:
        args.append(p)
        in_specs.append(pl.BlockSpec(p.shape, const))
    # fc_out bias: scalar in SMEM.
    args.append(params[-1])
    in_specs.append(pl.BlockSpec(memory_space=pltpu.MemorySpace.SMEM))

    est = _estimate_vmem_bytes(Bt, Pt, V, H, L, occ_bytes, act_bytes,
                               param_bytes)
    vmem_limit = int(min(budget, max(32 << 20, 2 * est)))

    out = pl.pallas_call(
        make_merger_kernel(L, V, Bt, Pt, H, act_dtype),
        out_shape=jax.ShapeDtypeStruct((B, P), jnp.float32),
        grid=grid,
        in_specs=in_specs,
        out_specs=pl.BlockSpec((Bt, Pt), lambda bi, pi: (bi, pi)),
        compiler_params=pltpu.CompilerParams(
            dimension_semantics=("parallel", "parallel"),
            vmem_limit_bytes=vmem_limit,
        ),
    )(*args)
    return out


def merger_reference(occ, Ws, bs, fc_w, fc_b):
    """Pure-JAX reference mirroring the PyTorch forward."""
    net = occ
    L = len(Ws)
    pooled = None
    for l in range(L):
        h = jnp.maximum(net, 0.0)
        net = h @ Ws[l] + bs[l]
        pooled = jnp.max(net, axis=1)                         # (B, P, H)
        if l < L - 1:
            net = jnp.concatenate(
                [net, jnp.broadcast_to(pooled[:, None], net.shape)], axis=-1)
    h = jnp.maximum(pooled, 0.0)
    out = h @ fc_w + fc_b
    return out[..., 0]


def init_params(key, hidden_size, num_layers):
    """PyTorch-Linear-style init (uniform +-1/sqrt(fan_in)); weights stored
    as (in, out) so both reference and kernel compute x @ W + b."""
    Ws, bs = [], []
    in_dims = [hidden_size] + [2 * hidden_size] * (num_layers - 1)
    for d_in in in_dims:
        key, kw, kb = jax.random.split(key, 3)
        bound = 1.0 / (d_in ** 0.5)
        Ws.append(jax.random.uniform(kw, (d_in, hidden_size), jnp.float32,
                                     -bound, bound))
        bs.append(jax.random.uniform(kb, (hidden_size,), jnp.float32,
                                     -bound, bound))
    key, kw, kb = jax.random.split(key, 3)
    bound = 1.0 / (hidden_size ** 0.5)
    fc_w = jax.random.uniform(kw, (hidden_size, 1), jnp.float32, -bound, bound)
    fc_b = jax.random.uniform(kb, (1,), jnp.float32, -bound, bound)
    return Ws, bs, fc_w, fc_b


if __name__ == "__main__":
    # Small shapes: batch=2, views=4, points=16, hidden=32, decoder_layers=3.
    B, V, P, H = 2, 4, 16, 32
    num_layers = 3

    key = jax.random.PRNGKey(0)
    key, k_occ, k_par = jax.random.split(key, 3)
    occ = jax.random.normal(k_occ, (B, V, P, H), jnp.float32)
    Ws, bs, fc_w, fc_b = init_params(k_par, H, num_layers)

    ref = merger_reference(occ, Ws, bs, fc_w, fc_b)

    # f32 matmul path: tight check.
    params_f32 = prepare_params(Ws, bs, fc_w, fc_b, use_bf16=False)
    out_f32 = jax.block_until_ready(
        merger_forward(occ, params_f32, use_bf16=False))
    assert out_f32.shape == (B, P), out_f32.shape
    assert jnp.allclose(out_f32, ref, atol=1e-4, rtol=1e-4), (
        float(jnp.max(jnp.abs(out_f32 - ref))))

    # bf16 path (bf16 occ DMA + bf16 weights, bf16 activations where the chip
    # has a bf16 VPU; matmuls accumulate in f32): relaxed check.
    params_bf16 = prepare_params(Ws, bs, fc_w, fc_b, use_bf16=True)
    out_bf16 = jax.block_until_ready(
        merger_forward(occ.astype(jnp.bfloat16), params_bf16, use_bf16=True))
    assert out_bf16.shape == (B, P), out_bf16.shape
    assert jnp.allclose(out_bf16, ref, atol=1.5e-1, rtol=1.5e-1), (
        float(jnp.max(jnp.abs(out_bf16 - ref))))

    print("KERNEL_OK")
</pallas_src>

<mosaic_0001>
module attributes {stable_mosaic.version = 11 : i64} {
  func.func @kernel(%arg0: i32, %arg1: i32, %arg2: memref<2x4x16x32xf32, #tpu.memory_space<vmem>>, %arg3: memref<32x32xf32, #tpu.memory_space<vmem>>, %arg4: memref<1x32xf32, #tpu.memory_space<vmem>>, %arg5: memref<32x32xf32, #tpu.memory_space<vmem>>, %arg6: memref<32x32xf32, #tpu.memory_space<vmem>>, %arg7: memref<1x32xf32, #tpu.memory_space<vmem>>, %arg8: memref<32x32xf32, #tpu.memory_space<vmem>>, %arg9: memref<32x32xf32, #tpu.memory_space<vmem>>, %arg10: memref<1x32xf32, #tpu.memory_space<vmem>>, %arg11: memref<1x32xf32, #tpu.memory_space<vmem>>, %arg12: memref<1xf32, #tpu.memory_space<smem>>, %arg13: memref<2x16xf32, #tpu.memory_space<vmem>>) attributes {dimension_semantics = [#tpu.dimension_semantics<parallel>, #tpu.dimension_semantics<parallel>], iteration_bounds = array<i64: 1, 1>, scalar_prefetch = 0 : i64, scratch_operands = 0 : i64, tpu.core_type = #tpu.core_type<tc>, window_params = [{transform_indices = @transform_0, window_bounds = array<i64: 2, 4, 16, 32>}, {pipeline_mode = #tpu.pipeline_mode<synchronous>, transform_indices = @transform_1, window_bounds = array<i64: 32, 32>}, {pipeline_mode = #tpu.pipeline_mode<synchronous>, transform_indices = @transform_2, window_bounds = array<i64: 1, 32>}, {pipeline_mode = #tpu.pipeline_mode<synchronous>, transform_indices = @transform_3, window_bounds = array<i64: 32, 32>}, {pipeline_mode = #tpu.pipeline_mode<synchronous>, transform_indices = @transform_4, window_bounds = array<i64: 32, 32>}, {pipeline_mode = #tpu.pipeline_mode<synchronous>, transform_indices = @transform_5, window_bounds = array<i64: 1, 32>}, {pipeline_mode = #tpu.pipeline_mode<synchronous>, transform_indices = @transform_6, window_bounds = array<i64: 32, 32>}, {pipeline_mode = #tpu.pipeline_mode<synchronous>, transform_indices = @transform_7, window_bounds = array<i64: 32, 32>}, {pipeline_mode = #tpu.pipeline_mode<synchronous>, transform_indices = @transform_8, window_bounds = array<i64: 1, 32>}, {pipeline_mode = #tpu.pipeline_mode<synchronous>, transform_indices = @transform_9, window_bounds = array<i64: 1, 32>}, {transform_indices = @transform_10, window_bounds = array<i64: 1>}, {transform_indices = @transform_11, window_bounds = array<i64: 2, 16>}]} {
    %c0 = arith.constant 0 : index
    %c0_0 = arith.constant 0 : index
    %0 = vector.load %arg3[%c0, %c0_0] : memref<32x32xf32, #tpu.memory_space<vmem>>, vector<32x32xf32>
    %c0_1 = arith.constant 0 : index
    %c0_2 = arith.constant 0 : index
    %1 = vector.load %arg4[%c0_1, %c0_2] : memref<1x32xf32, #tpu.memory_space<vmem>>, vector<1x32xf32>
    %c0_3 = arith.constant 0 : index
    %c0_4 = arith.constant 0 : index
    %2 = vector.load %arg11[%c0_3, %c0_4] : memref<1x32xf32, #tpu.memory_space<vmem>>, vector<1x32xf32>
    %c0_5 = arith.constant 0 : index
    %3 = memref.load %arg12[%c0_5] : memref<1xf32, #tpu.memory_space<smem>>
    %c0_6 = arith.constant 0 : index
    %c0_7 = arith.constant 0 : index
    %c0_8 = arith.constant 0 : index
    %c0_9 = arith.constant 0 : index
    %4 = vector.load %arg2[%c0_6, %c0_7, %c0_8, %c0_9] : memref<2x4x16x32xf32, #tpu.memory_space<vmem>>, vector<2x4x16x32xf32>
    %cst = arith.constant 0.000000e+00 : f32
    %5 = vector.broadcast %cst : f32 to vector<2x4x16x32xf32>
    %6 = arith.maximumf %4, %5 : vector<2x4x16x32xf32>
    %7 = vector.shape_cast %6 : vector<2x4x16x32xf32> to vector<128x32xf32>
    %cst_10 = arith.constant dense<0.000000e+00> : vector<128x32xf32>
    %8 = tpu.matmul %7, %0, %cst_10 {dimension_numbers = #tpu.dot_dimension_numbers<[1], [0], [0], [1], [0, 0, 1, 1], [], []>} : vector<128x32xf32>, vector<32x32xf32>, vector<128x32xf32> -> vector<128x32xf32>
    %9 = vector.shape_cast %8 : vector<128x32xf32> to vector<2x4x16x32xf32>
    %10 = vector.shape_cast %1 : vector<1x32xf32> to vector<1x1x1x32xf32>
    %11 = vector.broadcast %10 : vector<1x1x1x32xf32> to vector<2x4x16x32xf32>
    %12 = arith.addf %9, %11 : vector<2x4x16x32xf32>
    %cst_11 = arith.constant 0.000000e+00 : f32
    %13 = vector.broadcast %cst_11 : f32 to vector<2x4x16x32xf32>
    %14 = arith.maximumf %12, %13 : vector<2x4x16x32xf32>
    %cst_12 = arith.constant dense<0xFF800000> : vector<2x16x32xf32>
    %15 = vector.multi_reduction <maximumf>, %14, %cst_12 [1] : vector<2x4x16x32xf32> to vector<2x16x32xf32>
    %c0_13 = arith.constant 0 : index
    %c0_14 = arith.constant 0 : index
    %16 = vector.load %arg5[%c0_13, %c0_14] : memref<32x32xf32, #tpu.memory_space<vmem>>, vector<32x32xf32>
    %c0_15 = arith.constant 0 : index
    %c0_16 = arith.constant 0 : index
    %17 = vector.load %arg6[%c0_15, %c0_16] : memref<32x32xf32, #tpu.memory_space<vmem>>, vector<32x32xf32>
    %c0_17 = arith.constant 0 : index
    %c0_18 = arith.constant 0 : index
    %18 = vector.load %arg7[%c0_17, %c0_18] : memref<1x32xf32, #tpu.memory_space<vmem>>, vector<1x32xf32>
    %19 = vector.shape_cast %14 : vector<2x4x16x32xf32> to vector<128x32xf32>
    %cst_19 = arith.constant dense<0.000000e+00> : vector<128x32xf32>
    %20 = tpu.matmul %19, %16, %cst_19 {dimension_numbers = #tpu.dot_dimension_numbers<[1], [0], [0], [1], [0, 0, 1, 1], [], []>} : vector<128x32xf32>, vector<32x32xf32>, vector<128x32xf32> -> vector<128x32xf32>
    %21 = vector.shape_cast %15 : vector<2x16x32xf32> to vector<32x32xf32>
    %cst_20 = arith.constant dense<0.000000e+00> : vector<32x32xf32>
    %22 = tpu.matmul %21, %17, %cst_20 {dimension_numbers = #tpu.dot_dimension_numbers<[1], [0], [0], [1], [0, 0, 1, 1], [], []>} : vector<32x32xf32>, vector<32x32xf32>, vector<32x32xf32> -> vector<32x32xf32>
    %23 = vector.shape_cast %20 : vector<128x32xf32> to vector<2x4x16x32xf32>
    %24 = vector.shape_cast %22 : vector<32x32xf32> to vector<2x1x16x32xf32>
    %25 = vector.shape_cast %18 : vector<1x32xf32> to vector<1x1x1x32xf32>
    %26 = vector.broadcast %25 : vector<1x1x1x32xf32> to vector<2x1x16x32xf32>
    %27 = arith.addf %24, %26 : vector<2x1x16x32xf32>
    %28 = vector.broadcast %27 : vector<2x1x16x32xf32> to vector<2x4x16x32xf32>
    %29 = arith.addf %23, %28 : vector<2x4x16x32xf32>
    %cst_21 = arith.constant 0.000000e+00 : f32
    %30 = vector.broadcast %cst_21 : f32 to vector<2x4x16x32xf32>
    %31 = arith.maximumf %29, %30 : vector<2x4x16x32xf32>
    %cst_22 = arith.constant dense<0xFF800000> : vector<2x16x32xf32>
    %32 = vector.multi_reduction <maximumf>, %31, %cst_22 [1] : vector<2x4x16x32xf32> to vector<2x16x32xf32>
    %c0_23 = arith.constant 0 : index
    %c0_24 = arith.constant 0 : index
    %33 = vector.load %arg8[%c0_23, %c0_24] : memref<32x32xf32, #tpu.memory_space<vmem>>, vector<32x32xf32>
    %c0_25 = arith.constant 0 : index
    %c0_26 = arith.constant 0 : index
    %34 = vector.load %arg9[%c0_25, %c0_26] : memref<32x32xf32, #tpu.memory_space<vmem>>, vector<32x32xf32>
    %c0_27 = arith.constant 0 : index
    %c0_28 = arith.constant 0 : index
    %35 = vector.load %arg10[%c0_27, %c0_28] : memref<1x32xf32, #tpu.memory_space<vmem>>, vector<1x32xf32>
    %36 = vector.shape_cast %31 : vector<2x4x16x32xf32> to vector<128x32xf32>
    %cst_29 = arith.constant dense<0.000000e+00> : vector<128x32xf32>
    %37 = tpu.matmul %36, %33, %cst_29 {dimension_numbers = #tpu.dot_dimension_numbers<[1], [0], [0], [1], [0, 0, 1, 1], [], []>} : vector<128x32xf32>, vector<32x32xf32>, vector<128x32xf32> -> vector<128x32xf32>
    %38 = vector.shape_cast %32 : vector<2x16x32xf32> to vector<32x32xf32>
    %cst_30 = arith.constant dense<0.000000e+00> : vector<32x32xf32>
    %39 = tpu.matmul %38, %34, %cst_30 {dimension_numbers = #tpu.dot_dimension_numbers<[1], [0], [0], [1], [0, 0, 1, 1], [], []>} : vector<32x32xf32>, vector<32x32xf32>, vector<32x32xf32> -> vector<32x32xf32>
    %40 = vector.shape_cast %37 : vector<128x32xf32> to vector<2x4x16x32xf32>
    %cst_31 = arith.constant dense<0xFF800000> : vector<2x16x32xf32>
    %41 = vector.multi_reduction <maximumf>, %40, %cst_31 [1] : vector<2x4x16x32xf32> to vector<2x16x32xf32>
    %42 = vector.shape_cast %39 : vector<32x32xf32> to vector<2x16x32xf32>
    %43 = arith.addf %41, %42 : vector<2x16x32xf32>
    %44 = vector.shape_cast %35 : vector<1x32xf32> to vector<1x1x32xf32>
    %45 = vector.broadcast %44 : vector<1x1x32xf32> to vector<2x16x32xf32>
    %46 = arith.addf %43, %45 : vector<2x16x32xf32>
    %cst_32 = arith.constant 0.000000e+00 : f32
    %47 = vector.broadcast %cst_32 : f32 to vector<2x16x32xf32>
    %48 = arith.maximumf %46, %47 : vector<2x16x32xf32>
    %49 = vector.shape_cast %2 : vector<1x32xf32> to vector<1x1x32xf32>
    %50 = vector.broadcast %49 : vector<1x1x32xf32> to vector<2x16x32xf32>
    %51 = arith.mulf %48, %50 : vector<2x16x32xf32>
    %cst_33 = arith.constant dense<0.000000e+00> : vector<2x16xf32>
    %52 = vector.multi_reduction <add>, %51, %cst_33 [2] : vector<2x16x32xf32> to vector<2x16xf32>
    %53 = vector.broadcast %3 : f32 to vector<2x16xf32>
    %54 = arith.addf %52, %53 : vector<2x16xf32>
    %c0_34 = arith.constant 0 : index
    %c0_35 = arith.constant 0 : index
    %55 = vector.load %arg13[%c0_34, %c0_35] : memref<2x16xf32, #tpu.memory_space<vmem>>, vector<2x16xf32>
    tpu.vector_store %arg13[%c0_34, %c0_35], %54 {strides = array<i32>} : memref<2x16xf32, #tpu.memory_space<vmem>>, vector<2x16xf32>,
    return
  }
  func.func @transform_0(%arg0: i32, %arg1: i32) -> (i32, i32, i32, i32) {
    %c0_i32 = arith.constant 0 : i32
    %c0_i32_0 = arith.constant 0 : i32
    %c0_i32_1 = arith.constant 0 : i32
    return %arg0, %c0_i32, %arg1, %c0_i32_0 : i32, i32, i32, i32
  }
  func.func @transform_1(%arg0: i32, %arg1: i32) -> (i32, i32) {
    %c0_i32 = arith.constant 0 : i32
    %c0_i32_0 = arith.constant 0 : i32
    %c0_i32_1 = arith.constant 0 : i32
    return %c0_i32, %c0_i32_0 : i32, i32
  }
  func.func @transform_2(%arg0: i32, %arg1: i32) -> (i32, i32) {
    %c0_i32 = arith.constant 0 : i32
    %c0_i32_0 = arith.constant 0 : i32
    %c0_i32_1 = arith.constant 0 : i32
    return %c0_i32, %c0_i32_0 : i32, i32
  }
  func.func @transform_3(%arg0: i32, %arg1: i32) -> (i32, i32) {
    %c0_i32 = arith.constant 0 : i32
    %c0_i32_0 = arith.constant 0 : i32
    %c0_i32_1 = arith.constant 0 : i32
    return %c0_i32, %c0_i32_0 : i32, i32
  }
  func.func @transform_4(%arg0: i32, %arg1: i32) -> (i32, i32) {
    %c0_i32 = arith.constant 0 : i32
    %c0_i32_0 = arith.constant 0 : i32
    %c0_i32_1 = arith.constant 0 : i32
    return %c0_i32, %c0_i32_0 : i32, i32
  }
  func.func @transform_5(%arg0: i32, %arg1: i32) -> (i32, i32) {
    %c0_i32 = arith.constant 0 : i32
    %c0_i32_0 = arith.constant 0 : i32
    %c0_i32_1 = arith.constant 0 : i32
    return %c0_i32, %c0_i32_0 : i32, i32
  }
  func.func @transform_6(%arg0: i32, %arg1: i32) -> (i32, i32) {
    %c0_i32 = arith.constant 0 : i32
    %c0_i32_0 = arith.constant 0 : i32
    %c0_i32_1 = arith.constant 0 : i32
    return %c0_i32, %c0_i32_0 : i32, i32
  }
  func.func @transform_7(%arg0: i32, %arg1: i32) -> (i32, i32) {
    %c0_i32 = arith.constant 0 : i32
    %c0_i32_0 = arith.constant 0 : i32
    %c0_i32_1 = arith.constant 0 : i32
    return %c0_i32, %c0_i32_0 : i32, i32
  }
  func.func @transform_8(%arg0: i32, %arg1: i32) -> (i32, i32) {
    %c0_i32 = arith.constant 0 : i32
    %c0_i32_0 = arith.constant 0 : i32
    %c0_i32_1 = arith.constant 0 : i32
    return %c0_i32, %c0_i32_0 : i32, i32
  }
  func.func @transform_9(%arg0: i32, %arg1: i32) -> (i32, i32) {
    %c0_i32 = arith.constant 0 : i32
    %c0_i32_0 = arith.constant 0 : i32
    %c0_i32_1 = arith.constant 0 : i32
    return %c0_i32, %c0_i32_0 : i32, i32
  }
  func.func @transform_10(%arg0: i32, %arg1: i32) -> i32 {
    %c0_i32 = arith.constant 0 : i32
    %c0_i32_0 = arith.constant 0 : i32
    return %c0_i32 : i32
  }
  func.func @transform_11(%arg0: i32, %arg1: i32) -> (i32, i32) {
    %c0_i32 = arith.constant 0 : i32
    return %arg0, %arg1 : i32, i32
  }
}

</mosaic_0001>

<bundles_post_ra>
// kernel: tpu_custom_call.1
= control target key start
LH: loop header
LB: loop body
LE: loop exit
PB: predicated region body
PF: predicated region fallthrough
CT: control target
= control target key end

     0   :  { %17 = vsyncpa [#allocation4], 0  ;;  %s2021_s0 = inlined_call_operand.hbm [shape: f32[2,4,16,32], index: 0, kind: input, shape index: {}]   ;;  %s2022_s1 = inlined_call_operand.hbm [shape: f32[32,32], index: 1, kind: input, shape index: {}]   ;;  %s2023_s2 = inlined_call_operand.vmem [shape: f32[1,32], index: 2, kind: input, shape index: {}]   ;;  %s2024_s3 = inlined_call_operand.hbm [shape: f32[32,32], index: 3, kind: input, shape index: {}]   ;;  %s2025_s4 = inlined_call_operand.hbm [shape: f32[32,32], index: 4, kind: input, shape index: {}]   ;;  %s2026_s5 = inlined_call_operand.vmem [shape: f32[1,32], index: 5, kind: input, shape index: {}]   ;;  %s2027_s6 = inlined_call_operand.hbm [shape: f32[32,32], index: 6, kind: input, shape index: {}]   ;;  %s2028_s7 = inlined_call_operand.hbm [shape: f32[32,32], index: 7, kind: input, shape index: {}]   ;;  %s2029_s8 = inlined_call_operand.vmem [shape: f32[1,32], index: 8, kind: input, shape index: {}]   ;;  %s2030_s9 = inlined_call_operand.vmem [shape: f32[1,32], index: 9, kind: input, shape index: {}]   ;;  %s2031_s10 = inlined_call_operand.<no memory space> [shape: f32[1], index: 10, kind: input, shape index: {}]   ;;  %s2032_s11 = inlined_call_operand.hbm [shape: f32[2,16], index: 11, kind: output, shape index: {}]  }
   0x1   :  { %18 = vsyncpa [#allocation7], 0 }
   0x2   :  { %19 = vsyncpa [#allocation10], 0 }
   0x3   :  { %20 = vsyncpa [#allocation13], 0 }
   0x4   :  { %21 = vsyncpa [#allocation5], 0  ;;  %s1688_s17 = smov [#allocation6]   ;;  %s1689_s19 = smov [#allocation9]  }
   0x5   :  { %s39_s18 = sshll.u32 %s1688_s17, 4  ;;  %s65_s20 = sshll.u32 %s1689_s19, 4  ;;  %s40_s18 = int_to_ptr.vmem [resolvable:$true] %s39_s18  ;;  %s1757_s20 = int_to_ptr.vmem [resolvable:$true] %s65_s20 }
   0x6   :  { %s1524_s23 = scalar_lea.hbm %s2022_s1, 512 }
   0x7   :  { %p1525_p0 = scmp.ne.s32.totalorder %s2022_s1, %s1524_s23  ;;  %p1528_p1 = scmp.lt.u32.totalorder %s1524_s23, %s2022_s1 }
   0x9   :  { %p1530_p2 = pnand %p1528_p1, %p1525_p0 }
   0xb   :  { %1533 = shalt.err (!%p1530_p2)
}
   0xc   :  { %s1534_s28 = scalar_lea.vmem %s40_s18, 512  ;;  %p1539_p4 = scmp.lt.s32.totalorder %s40_s18, %s40_s18 }
   0xd   :  { %p1535_p3 = scmp.ne.s32.totalorder %s40_s18, %s1534_s28  ;;  %p1540_p5 = scmp.lt.s32.totalorder %s1534_s28, %s1534_s28 }
   0xf   :  { %p1541_p6 = por %p1540_p5, %p1539_p4 }
  0x11   :  { %p1542_p7 = pnand %p1541_p6, %p1535_p3 }
  0x13   :  { %1545 = shalt.err (!%p1542_p7)
}
  0x14   :  { %s1690_s29 = smov 128   ;;  %s1691_s30 = smov 8  }
  0x15   :  { %45 = dma.hbm_to_vmem [thread:$0]  %s2022_s1, 512, %s40_s18, [#allocation7], %s1690_s29, %s1690_s29, %s1691_s30  }
  0x16   :  { %s1546_s16 = scalar_lea.hbm %s2025_s4, 512 }
  0x17   :  { %p1547_p8 = scmp.ne.s32.totalorder %s2025_s4, %s1546_s16  ;;  %p1550_p9 = scmp.lt.u32.totalorder %s1546_s16, %s2025_s4 }
  0x19   :  { %p1552_p10 = pnand %p1550_p9, %p1547_p8 }
  0x1b   :  { %1555 = shalt.err (!%p1552_p10)
}
  0x1c   :  { %s1556_s23 = scalar_lea.vmem %s1757_s20, 512  ;;  %p1561_p12 = scmp.lt.s32.totalorder %s1757_s20, %s1757_s20 }
  0x1d   :  { %p1557_p11 = scmp.ne.s32.totalorder %s1757_s20, %s1556_s23  ;;  %p1562_p13 = scmp.lt.s32.totalorder %s1556_s23, %s1556_s23 }
  0x1f   :  { %p1563_p0 = por %p1562_p13, %p1561_p12 }
  0x21   :  { %p1564_p1 = pnand %p1563_p0, %p1557_p11 }
  0x23   :  { %1567 = shalt.err (!%p1564_p1)
}
  0x24   :  { %71 = dma.hbm_to_vmem [thread:$0]  %s2025_s4, 512, %s1757_s20, [#allocation10], %s1690_s29, %s1690_s29, %s1691_s30  }
  0x25   :  { %s1692_s24 = smov [#allocation3]   ;;  %s1693_s26 = smov [#allocation8]  }
  0x26   :  { %s27_s25 = sshll.u32 %s1692_s24, 4  ;;  %s53_s27 = sshll.u32 %s1693_s26, 4  ;;  %s28_s25 = int_to_ptr.vmem [resolvable:$true] %s27_s25  ;;  %s1794_s27 = int_to_ptr.vmem [resolvable:$true] %s53_s27 }
  0x27   :  { %s1568_s13 = scalar_lea.hbm %s2021_s0, 2048 }
  0x28   :  { %p1569_p2 = scmp.ne.s32.totalorder %s2021_s0, %s1568_s13  ;;  %p1572_p3 = scmp.lt.u32.totalorder %s1568_s13, %s2021_s0 }
  0x2a   :  { %p1574_p4 = pnand %p1572_p3, %p1569_p2 }
  0x2c   :  { %1577 = shalt.err (!%p1574_p4)
}
  0x2d   :  { %s1578_s4 = scalar_lea.vmem %s28_s25, 2048  ;;  %p1583_p6 = scmp.lt.s32.totalorder %s28_s25, %s28_s25 }
  0x2e   :  { %p1579_p5 = scmp.ne.s32.totalorder %s28_s25, %s1578_s4  ;;  %p1584_p7 = scmp.lt.s32.totalorder %s1578_s4, %s1578_s4 }
  0x30   :  { %p1585_p8 = por %p1584_p7, %p1583_p6 }
  0x32   :  { %p1586_p9 = pnand %p1585_p8, %p1579_p5 }
  0x34   :  { %1589 = shalt.err (!%p1586_p9)
}
  0x35   :  { %33 = dma.hbm_to_vmem [thread:$0]  %s2021_s0, 2048, %s28_s25, [#allocation4], %s1690_s29, %s1690_s29, %s1691_s30  }
  0x36   :  { %s1590_s23 = scalar_lea.hbm %s2024_s3, 512 }
  0x37   :  { %p1591_p10 = scmp.ne.s32.totalorder %s2024_s3, %s1590_s23  ;;  %p1594_p11 = scmp.lt.u32.totalorder %s1590_s23, %s2024_s3 }
  0x39   :  { %p1596_p12 = pnand %p1594_p11, %p1591_p10 }
  0x3b   :  { %1599 = shalt.err (!%p1596_p12)
}
  0x3c   :  { %s1600_s28 = scalar_lea.vmem %s1794_s27, 512  ;;  %p1605_p0 = scmp.lt.s32.totalorder %s1794_s27, %s1794_s27 }
  0x3d   :  { %p1601_p13 = scmp.ne.s32.totalorder %s1794_s27, %s1600_s28  ;;  %p1606_p1 = scmp.lt.s32.totalorder %s1600_s28, %s1600_s28 }
  0x3f   :  { %p1607_p2 = por %p1606_p1, %p1605_p0 }
  0x41   :  { %p1608_p3 = pnand %p1607_p2, %p1601_p13 }
  0x43   :  { %1611 = shalt.err (!%p1608_p3)
}
  0x44   :  { %59 = dma.hbm_to_vmem [thread:$0]  %s2024_s3, 512, %s1794_s27, [#allocation7], %s1690_s29, %s1690_s29, %s1691_s30  }
  0x45   :  { %s1694_s12 = smov [#allocation11]   ;;  %s1695_s14 = smov [#allocation12]  }
  0x46   :  { %s79_s13 = sshll.u32 %s1694_s12, 4  ;;  %s91_s15 = sshll.u32 %s1695_s14, 4  ;;  %s80_s13 = int_to_ptr.vmem [resolvable:$true] %s79_s13  ;;  %s1831_s15 = int_to_ptr.vmem [resolvable:$true] %s91_s15 }
  0x47   :  { %s1612_s4 = scalar_lea.hbm %s2027_s6, 512 }
  0x48   :  { %p1613_p4 = scmp.ne.s32.totalorder %s2027_s6, %s1612_s4  ;;  %p1616_p5 = scmp.lt.u32.totalorder %s1612_s4, %s2027_s6 }
  0x4a   :  { %p1618_p6 = pnand %p1616_p5, %p1613_p4 }
  0x4c   :  { %1621 = shalt.err (!%p1618_p6)
}
  0x4d   :  { %s1622_s3 = scalar_lea.vmem %s80_s13, 512  ;;  %p1627_p8 = scmp.lt.s32.totalorder %s80_s13, %s80_s13 }
  0x4e   :  { %p1623_p7 = scmp.ne.s32.totalorder %s80_s13, %s1622_s3  ;;  %p1628_p9 = scmp.lt.s32.totalorder %s1622_s3, %s1622_s3 }
  0x50   :  { %p1629_p10 = por %p1628_p9, %p1627_p8 }
  0x52   :  { %p1630_p11 = pnand %p1629_p10, %p1623_p7 }
  0x54   :  { %1633 = shalt.err (!%p1630_p11)
}
  0x55   :  { %85 = dma.hbm_to_vmem [thread:$0]  %s2027_s6, 512, %s80_s13, [#allocation10], %s1690_s29, %s1690_s29, %s1691_s30  }
  0x56   :  { %s1634_s24 = scalar_lea.hbm %s2028_s7, 512 }
  0x57   :  { %p1635_p12 = scmp.ne.s32.totalorder %s2028_s7, %s1634_s24  ;;  %p1638_p13 = scmp.lt.u32.totalorder %s1634_s24, %s2028_s7 }
  0x59   :  { %p1640_p0 = pnand %p1638_p13, %p1635_p12 }
  0x5b   :  { %1643 = shalt.err (!%p1640_p0)
}
  0x5c   :  { %s1644_s12 = scalar_lea.vmem %s1831_s15, 512  ;;  %p1649_p2 = scmp.lt.s32.totalorder %s1831_s15, %s1831_s15 }
  0x5d   :  { %p1645_p1 = scmp.ne.s32.totalorder %s1831_s15, %s1644_s12  ;;  %p1650_p3 = scmp.lt.s32.totalorder %s1644_s12, %s1644_s12 }
  0x5f   :  { %p1651_p4 = por %p1650_p3, %p1649_p2 }
  0x61   :  { %p1652_p5 = pnand %p1651_p4, %p1645_p1 }
  0x63   :  { %1655 = shalt.err (!%p1652_p5)
}
  0x64   :  { %97 = dma.hbm_to_vmem [thread:$0]  %s2028_s7, 512, %s1831_s15, [#allocation13], %s1690_s29, %s1690_s29, %s1691_s30  }
  0x65   :  { %1678 = dma.done.wait [#allocation4], 2048  }
  0x66   :  { %1679 = vsyncadd [#allocation4], 4294965248 }
  0x67   :  { %1680 = dma.done.wait [#allocation7], 1024  }
  0x68   :  { %1681 = vsyncadd [#allocation7], 4294966272 }
  0x69   :  { %1682 = dma.done.wait [#allocation10], 1024  }
  0x6a   :  { %1683 = vsyncadd [#allocation10], 4294966272 }
  0x6b   :  { %1684 = dma.done.wait [#allocation13], 512  }
  0x6c   :  { %1685 = vsyncadd [#allocation13], 4294966784  ;;  %v122_v0 = vld [vmem:[#allocation6] sm:$0xff]  ;;  %v123_v1 = vld [vmem:[#allocation6 + $0x8] sm:$0xff]  ;;  %vm161_vm0 = vcmask 261120   ;;  %vm1177_vm1 = vcmask 130112  }
  0x6d   :  { %v124_v2 = vld [vmem:[#allocation6 + $0x10] sm:$0xff]  ;;  %v1471_v3 = vpack.c.bf16 %v123_v1, %v122_v0  ;;  %v125_v4 = vld [vmem:[#allocation6 + $0x18] sm:$0xff]  ;;  %v129_v5 = vld [vmem:[#allocation3] sm:$0xff]  ;;  %s1696_s17 = smov [#allocation14]   ;;  %vm1188_vm2 = vcmask 1041409   ;;  %vm1191_vm3 = vcmask 123904  }
  0x6e   :  { %v1475_v6 = vpack.c.bf16 %v125_v4, %v124_v2  ;;  %v145_v7 = vmax.f32 %v129_v5, 0.0  ;;  %v130_v8 = vld [vmem:[#allocation3 + $0x8] sm:$0xff]  ;;  %v131_v9 = vld [vmem:[#allocation3 + $0x10] sm:$0xff]  ;;  %v421_v10 = vld [vmem:[#allocation8] sm:$0xff]  ;;  %s1199_s4 = sshll.u32 %s1696_s17, 4  ;;  %s1200_s4 = int_to_ptr.vmem [resolvable:$true] %s1199_s4 }
  0x6f   :  { %1472 = vmatprep.subr.bf16.mxu0 %v1471_v3  ;;  %v146_v11 = vmax.f32 %v130_v8, 0.0  ;;  %v422_v12 = vld [vmem:[#allocation8 + $0x8] sm:$0xff]  ;;  %v423_v13 = vld [vmem:[#allocation8 + $0x10] sm:$0xff]  ;;  %v424_v14 = vld [vmem:[#allocation8 + $0x18] sm:$0xff]  ;;  %v147_v15 = vmax.f32 %v131_v9, 0.0  ;;  %p1661_p7 = scmp.lt.s32.totalorder %s1200_s4, %s1200_s4 }
  0x70   :  { %1474 = vmatpush3.bf16.msra.mxu0 %v1471_v3  ;;  %1355 = vmatprep.mubr.msk.f32.mxu0 %vm161_vm0, %v145_v7  ;;  %v132_v16 = vld [vmem:[#allocation3 + $0x18] sm:$0xff]  ;;  %v1479_v17 = vpack.c.bf16 %v422_v12, %v421_v10  ;;  %v133_v18 = vld [vmem:[#allocation3 + $0x20] sm:$0xff]  ;;  %v1483_v19 = vpack.c.bf16 %v424_v14, %v423_v13  ;;  %v134_v22 = vld [vmem:[#allocation3 + $0x28] sm:$0xff] }
  0x71   :  { %1476 = vmatprep.subr.bf16.mxu0 %v1475_v6  ;;  %v148_v20 = vmax.f32 %v132_v16, 0.0  ;;  %v149_v21 = vmax.f32 %v133_v18, 0.0  ;;  %v135_v23 = vld [vmem:[#allocation3 + $0x30] sm:$0xff]  ;;  %v150_v24 = vmax.f32 %v134_v22, 0.0  ;;  %v136_v26 = vld [vmem:[#allocation3 + $0x38] sm:$0xff]  ;;  %v137_v27 = vld [vmem:[#allocation3 + $0x40] sm:$0xff] }
  0x72   :  { %1511 = vmatprep.subr.bf16.mxu1 %v1479_v17  ;;  %v151_v25 = vmax.f32 %v135_v23, 0.0  ;;  %v152_v28 = vmax.f32 %v136_v26, 0.0  ;;  %v153_v29 = vmax.f32 %v137_v27, 0.0  ;;  %v138_v30 = vld [vmem:[#allocation3 + $0x48] sm:$0xff]  ;;  %v139_v31 = vld [vmem:[#allocation3 + $0x50] sm:$0xff]  ;;  %v140_v34 = vld [vmem:[#allocation3 + $0x58] sm:$0xff] }
  0x73   :  { %1513 = vmatpush3.bf16.msra.mxu1 %v1479_v17  ;;  %v154_v32 = vmax.f32 %v138_v30, 0.0  ;;  %v155_v33 = vmax.f32 %v139_v31, 0.0  ;;  %v141_v35 = vld [vmem:[#allocation3 + $0x60] sm:$0xff]  ;;  %v156_v36 = vmax.f32 %v140_v34, 0.0  ;;  %v142_v38 = vld [vmem:[#allocation3 + $0x68] sm:$0xff]  ;;  %v143_v39 = vld [vmem:[#allocation3 + $0x70] sm:$0xff] }
  0x74   :  { %1478 = vmatpush3.bf16.msra.mxu0 %v1475_v6  ;;  %1512 = vmatprep.subr.bf16.mxu1 %v1483_v19  ;;  %v157_v37 = vmax.f32 %v141_v35, 0.0  ;;  %v158_v40 = vmax.f32 %v142_v38, 0.0  ;;  %v159_v41 = vmax.f32 %v143_v39, 0.0  ;;  %v144_v42 = vld [vmem:[#allocation3 + $0x78] sm:$0xff]  ;;  %v425_v44 = vld [vmem:[#allocation9] sm:$0xff]  ;;  %v426_v45 = vld [vmem:[#allocation9 + $0x8] sm:$0xff] }
  0x75   :  { %1480 = vmatprep.subr.bf16.mxu0 %v1479_v17  ;;  %v160_v43 = vmax.f32 %v144_v42, 0.0  ;;  %v1487_v46 = vpack.c.bf16 %v426_v45, %v425_v44  ;;  %v790_v47 = vld [vmem:[#allocation11] sm:$0xff]  ;;  %v791_v48 = vld [vmem:[#allocation11 + $0x8] sm:$0xff]  ;;  %v427_v55 = vld [vmem:[#allocation9 + $0x10] sm:$0xff] }
  0x76   :  { %v1495_v49 = vpack.c.bf16 %v791_v48, %v790_v47  ;;  %v1887_v50 = vld [vmem:[%s2023_s2] ss:$0 sm:$0xff]  ;;  %v428_v56 = vld [vmem:[#allocation9 + $0x18] sm:$0xff] }
  0x77   :  { %1356 = vmatmul.mubr.msk.f32.vlgmr.msra.gmra.mrb[0].mxu0 %vm161_vm0, %v146_v11  ;;  %1514 = vmatpush3.bf16.msra.mxu1 %v1483_v19  ;;  %v1491_v62 = vpack.c.bf16 %v428_v56, %v427_v55 }
  0x78   :  { %1358 = vmatprep.mubr.msk.f32.mxu0 %vm161_vm0, %v147_v15  ;;  %1482 = vmatpush3.bf16.msra.mxu0 %v1479_v17 }
  0x79   :  { %1484 = vmatprep.subr.bf16.mxu0 %v1483_v19  ;;  %1496 = vmatprep.subr.bf16.mxu1 %v1495_v49 }
  0x7b   :  { %1359 = vmatmul.mubr.msk.f32.gmra.mrb[2].mxu0 %vm161_vm0, %v148_v20 }
  0x7c   :  { %1361 = vmatprep.mubr.msk.f32.mxu0 %vm161_vm0, %v149_v21  ;;  %1486 = vmatpush3.bf16.msra.mxu0 %v1483_v19 }
  0x7d   :  { %1488 = vmatprep.subr.bf16.mxu0 %v1487_v46 }
  0x7f   :  { %1362 = vmatmul.mubr.msk.f32.gmra.mrb[4].mxu0 %vm161_vm0, %v150_v24 }
  0x80   :  { %1364 = vmatprep.mubr.msk.f32.mxu0 %vm161_vm0, %v151_v25 }
  0x83   :  { %1365 = vmatmul.mubr.msk.f32.gmra.mrb[6].mxu0 %vm161_vm0, %v152_v28 }
  0x84   :  { %1367 = vmatprep.mubr.msk.f32.mxu0 %vm161_vm0, %v153_v29 }
  0x87   :  { %1368 = vmatmul.mubr.msk.f32.gmra.mrb[8].mxu0 %vm161_vm0, %v154_v32 }
  0x88   :  { %1370 = vmatprep.mubr.msk.f32.mxu0 %vm161_vm0, %v155_v33 }
  0x8b   :  { %1371 = vmatmul.mubr.msk.f32.gmra.mrb[10].mxu0 %vm161_vm0, %v156_v36 }
  0x8c   :  { %1373 = vmatprep.mubr.msk.f32.mxu0 %vm161_vm0, %v157_v37 }
  0x8f   :  { %1374 = vmatmul.mubr.msk.f32.gmra.mrb[12].mxu0 %vm161_vm0, %v158_v40 }
  0x90   :  { %1376 = vmatprep.mubr.msk.f32.mxu0 %vm161_vm0, %v159_v41 }
  0x93   :  { %1377 = vmatmul.mubr.msk.f32.gmra.mrb[14].mxu0 %vm161_vm0, %v160_v43 }
 0x14a   :  { %v1357_v51 = vpop.f32.mrb[0].mxu0 }
 0x14b   :  { %v362_v52 = vadd.f32 %v1357_v51, %v1887_v50  ;;  %v276_v53 = vpop.f32.mrb[1].mxu0 }
 0x14c   :  { %v361_v54 = vadd.f32 %v1887_v50, %v276_v53 }
 0x14d   :  { %v378_v59 = vmax.f32 %v362_v52, 0.0 }
 0x14e   :  { %v377_v57 = vmax.f32 %v361_v54, 0.0  ;;  %v1360_v58 = vpop.f32.mrb[2].mxu0 }
 0x14f   :  { %v364_v60 = vadd.f32 %v1360_v58, %v1887_v50  ;;  %v286_v61 = vpop.f32.mrb[3].mxu0  ;;  %v400_v3 = vsel %vm161_vm0, %v378_v59, -inf }
 0x150   :  { %v363_v63 = vadd.f32 %v1887_v50, %v286_v61  ;;  %1387 = vmatprep.mubr.msk.f32.mxu0 %vm161_vm0, %v377_v57  ;;  %v393_v7 = vsel %vm161_vm0, %v377_v57, -inf }
 0x151   :  { %v380_v0 = vmax.f32 %v364_v60, 0.0  ;;  %1388 = vmatmul.mubr.msk.f32.vlgmr.msra.gmra.mrb[16].mxu0 %vm161_vm0, %v378_v59 }
 0x152   :  { %v379_v1 = vmax.f32 %v363_v63, 0.0  ;;  %v1363_v2 = vpop.f32.mrb[4].mxu0  ;;  %1490 = vmatpush3.bf16.msra.mxu0 %v1487_v46 }
 0x153   :  { %v401_v4 = vsel %vm161_vm0, %v380_v0, -inf  ;;  %v366_v5 = vadd.f32 %v1363_v2, %v1887_v50  ;;  %v296_v6 = vpop.f32.mrb[5].mxu0  ;;  %1492 = vmatprep.subr.bf16.mxu0 %v1491_v62 }
 0x154   :  { %v402_v8 = vmax.f32 %v400_v3, %v401_v4  ;;  %v394_v9 = vsel %vm161_vm0, %v379_v1, -inf  ;;  %v365_v10 = vadd.f32 %v1887_v50, %v296_v6  ;;  %1390 = vmatprep.mubr.msk.f32.mxu0 %vm161_vm0, %v379_v1  ;;  %v793_v3 = vld [vmem:[#allocation11 + $0x18] sm:$0xff]  ;;  %v795_v6 = vld [vmem:[#allocation12 + $0x8] sm:$0xff] }
 0x155   :  { %v395_v11 = vmax.f32 %v393_v7, %v394_v9  ;;  %v382_v12 = vmax.f32 %v366_v5, 0.0  ;;  %1391 = vmatmul.mubr.msk.f32.gmra.mrb[18].mxu0 %vm161_vm0, %v380_v0  ;;  %v794_v5 = vld [vmem:[#allocation12] sm:$0xff]  ;;  %v797_v9 = vld [vmem:[#allocation12 + $0x18] sm:$0xff] }
 0x156   :  { %v381_v13 = vmax.f32 %v365_v10, 0.0  ;;  %v1366_v14 = vpop.f32.mrb[6].mxu0  ;;  %1494 = vmatpush3.bf16.msra.mxu0 %v1491_v62  ;;  %v1503_v7 = vpack.c.bf16 %v795_v6, %v794_v5 }
 0x157   :  { %v403_v15 = vsel %vm161_vm0, %v382_v12, -inf  ;;  %v368_v16 = vadd.f32 %v1366_v14, %v1887_v50  ;;  %v306_v17 = vpop.f32.mrb[7].mxu0 }
 0x158   :  { %v404_v18 = vmax.f32 %v402_v8, %v403_v15  ;;  %v396_v19 = vsel %vm161_vm0, %v381_v13, -inf  ;;  %v367_v20 = vadd.f32 %v1887_v50, %v306_v17  ;;  %1393 = vmatprep.mubr.msk.f32.mxu1 %vm161_vm0, %v381_v13  ;;  %1504 = vmatprep.subr.bf16.mxu0 %v1503_v7  ;;  %v796_v8 = vld [vmem:[#allocation12 + $0x10] sm:$0xff] }
 0x159   :  { %v397_v21 = vmax.f32 %v395_v11, %v396_v19  ;;  %v384_v22 = vmax.f32 %v368_v16, 0.0  ;;  %1394 = vmatmul.mubr.msk.f32.vlgmr.msra.gmra.mrb[0].mxu1 %vm161_vm0, %v382_v12  ;;  %v1507_v10 = vpack.c.bf16 %v797_v9, %v796_v8  ;;  %v1248_v19 = vld [vmem:[%s2026_s5] ss:$0 sm:$0xff] }
 0x15a   :  { %v383_v23 = vmax.f32 %v367_v20, 0.0  ;;  %v1369_v24 = vpop.f32.mrb[8].mxu0  ;;  %1498 = vmatpush3.bf16.msra.mxu1 %v1495_v49 }
 0x15b   :  { %v405_v25 = vsel %vm161_vm0, %v384_v22, -inf  ;;  %v370_v26 = vadd.f32 %v1369_v24, %v1887_v50  ;;  %v316_v27 = vpop.f32.mrb[9].mxu0 }
 0x15c   :  { %v406_v28 = vmax.f32 %v404_v18, %v405_v25  ;;  %v398_v29 = vsel %vm161_vm0, %v383_v23, -inf  ;;  %v369_v30 = vadd.f32 %v1887_v50, %v316_v27  ;;  %1396 = vmatprep.mubr.msk.f32.mxu1 %vm161_vm0, %v383_v23 }
 0x15d   :  { %v399_v31 = vmax.f32 %v397_v21, %v398_v29  ;;  %1397 = vmatmul.mubr.msk.f32.gmra.mrb[2].mxu1 %vm161_vm0, %v384_v22  ;;  %v386_v34 = vmax.f32 %v370_v26, 0.0 }
 0x15e   :  { %v385_v32 = vmax.f32 %v369_v30, 0.0  ;;  %v1372_v33 = vpop.f32.mrb[10].mxu0 }
 0x15f   :  { %v372_v35 = vadd.f32 %v1372_v33, %v1887_v50  ;;  %v326_v36 = vpop.f32.mrb[11].mxu0  ;;  %1419 = vmatprep.mubr.msk.f32.mxu0 %vm161_vm0, %v399_v31  ;;  %v414_v41 = vsel %vm161_vm0, %v386_v34, -inf }
 0x160   :  { %v371_v37 = vadd.f32 %v1887_v50, %v326_v36  ;;  %1399 = vmatprep.mubr.msk.f32.mxu1 %vm161_vm0, %v385_v32  ;;  %1420 = vmatmul.mubr.msk.f32.vlgmr.msra.gmra.mrb[20].mxu0 %vm161_vm0, %v406_v28  ;;  %v407_v45 = vsel %vm161_vm0, %v385_v32, -inf }
 0x161   :  { %v388_v38 = vmax.f32 %v372_v35, 0.0  ;;  %1400 = vmatmul.mubr.msk.f32.gmra.mrb[4].mxu1 %vm161_vm0, %v386_v34  ;;  %1506 = vmatpush3.bf16.msra.mxu0 %v1503_v7 }
 0x162   :  { %v387_v39 = vmax.f32 %v371_v37, 0.0  ;;  %v1375_v40 = vpop.f32.mrb[12].mxu0  ;;  %1508 = vmatprep.subr.bf16.mxu0 %v1507_v10 }
 0x163   :  { %v415_v42 = vsel %vm161_vm0, %v388_v38, -inf  ;;  %v374_v43 = vadd.f32 %v1375_v40, %v1887_v50  ;;  %v336_v44 = vpop.f32.mrb[13].mxu0 }
 0x164   :  { %v416_v46 = vmax.f32 %v414_v41, %v415_v42  ;;  %v408_v47 = vsel %vm161_vm0, %v387_v39, -inf  ;;  %v373_v48 = vadd.f32 %v1887_v50, %v336_v44  ;;  %1402 = vmatprep.mubr.msk.f32.mxu1 %vm161_vm0, %v387_v39 }
 0x165   :  { %v409_v49 = vmax.f32 %v407_v45, %v408_v47  ;;  %v390_v51 = vmax.f32 %v374_v43, 0.0  ;;  %1403 = vmatmul.mubr.msk.f32.gmra.mrb[6].mxu1 %vm161_vm0, %v388_v38  ;;  %1510 = vmatpush3.bf16.msra.mxu0 %v1507_v10 }
 0x166   :  { %v389_v52 = vmax.f32 %v373_v48, 0.0  ;;  %v1378_v53 = vpop.f32.mrb[14].mxu0 }
 0x167   :  { %v417_v54 = vsel %vm161_vm0, %v390_v51, -inf  ;;  %v376_v55 = vadd.f32 %v1378_v53, %v1887_v50  ;;  %v346_v56 = vpop.f32.mrb[15].mxu0 }
 0x168   :  { %v418_v57 = vmax.f32 %v416_v46, %v417_v54  ;;  %v410_v58 = vsel %vm161_vm0, %v389_v52, -inf  ;;  %v375_v59 = vadd.f32 %v1887_v50, %v346_v56  ;;  %1405 = vmatprep.mubr.msk.f32.mxu1 %vm161_vm0, %v389_v52  ;;  %v792_v50 = vld [vmem:[#allocation11 + $0x10] sm:$0xff] }
 0x169   :  { %v411_v60 = vmax.f32 %v409_v49, %v410_v58  ;;  %v392_v61 = vmax.f32 %v376_v55, 0.0  ;;  %1406 = vmatmul.mubr.msk.f32.gmra.mrb[8].mxu1 %vm161_vm0, %v390_v51  ;;  %v1499_v4 = vpack.c.bf16 %v793_v3, %v792_v50 }
 0x16a   :  { %v391_v62 = vmax.f32 %v375_v59, 0.0 }
 0x16b   :  { %v419_v63 = vsel %vm161_vm0, %v392_v61, -inf  ;;  %1500 = vmatprep.subr.bf16.mxu1 %v1499_v4 }
 0x16c   :  { %v420_v0 = vmax.f32 %v418_v57, %v419_v63  ;;  %v412_v1 = vsel %vm161_vm0, %v391_v62, -inf  ;;  %1408 = vmatprep.mubr.msk.f32.mxu1 %vm161_vm0, %v391_v62  ;;  %1502 = vmatpush3.bf16.msra.mxu1 %v1499_v4 }
 0x16d   :  { %v413_v2 = vmax.f32 %v411_v60, %v412_v1  ;;  %1409 = vmatmul.mubr.msk.f32.gmra.mrb[10].mxu1 %vm161_vm0, %v392_v61 }
 0x16f   :  { %1422 = vmatprep.mubr.msk.f32.mxu0 %vm161_vm0, %v413_v2 }
 0x170   :  { %1423 = vmatmul.mubr.msk.f32.gmra.mrb[22].mxu0 %vm161_vm0, %v420_v0 }
 0x224   :  { %v1389_v11 = vpop.f32.mrb[16].mxu0 }
 0x225   :  { %v544_v12 = vpop.f32.mrb[17].mxu0 }
 0x228   :  { %v1392_v13 = vpop.f32.mrb[18].mxu0 }
 0x229   :  { %v554_v14 = vpop.f32.mrb[19].mxu0 }
 0x22c   :  { %v1395_v15 = vpop.f32.mrb[0].mxu1 }
 0x22d   :  { %v564_v16 = vpop.f32.mrb[1].mxu1 }
 0x230   :  { %v1398_v17 = vpop.f32.mrb[2].mxu1 }
 0x231   :  { %v574_v18 = vpop.f32.mrb[3].mxu1 }
 0x233   :  { %v1421_v20 = vpop.f32.mrb[20].mxu0 }
 0x234   :  { %v727_v21 = vadd.f32 %v1421_v20, %v1248_v19  ;;  %v1401_v22 = vpop.f32.mrb[4].mxu1  ;;  %v701_v23 = vpop.f32.mrb[21].mxu0 }
 0x235   :  { %v726_v24 = vadd.f32 %v1248_v19, %v701_v23  ;;  %v584_v25 = vpop.f32.mrb[5].mxu1 }
 0x236   :  { %v731_v26 = vadd.f32 %v1389_v11, %v727_v21  ;;  %v735_v27 = vadd.f32 %v1395_v15, %v727_v21  ;;  %v737_v28 = vadd.f32 %v1398_v17, %v727_v21  ;;  %v733_v29 = vadd.f32 %v1392_v13, %v727_v21 }
 0x237   :  { %v736_v30 = vadd.f32 %v726_v24, %v574_v18  ;;  %v730_v31 = vadd.f32 %v726_v24, %v544_v12  ;;  %v732_v32 = vadd.f32 %v726_v24, %v554_v14  ;;  %v734_v33 = vadd.f32 %v726_v24, %v564_v16 }
 0x238   :  { %v747_v34 = vmax.f32 %v731_v26, 0.0  ;;  %v751_v35 = vmax.f32 %v735_v27, 0.0  ;;  %v1404_v36 = vpop.f32.mrb[6].mxu1  ;;  %v749_v37 = vmax.f32 %v733_v29, 0.0  ;;  %v753_v42 = vmax.f32 %v737_v28, 0.0 }
 0x239   :  { %v594_v38 = vpop.f32.mrb[7].mxu1  ;;  %v746_v39 = vmax.f32 %v730_v31, 0.0  ;;  %v748_v40 = vmax.f32 %v732_v32, 0.0  ;;  %v750_v41 = vmax.f32 %v734_v33, 0.0  ;;  %v752_v45 = vmax.f32 %v736_v30, 0.0 }
 0x23a   :  { %v769_v43 = vsel %vm161_vm0, %v747_v34, -inf  ;;  %v770_v44 = vsel %vm161_vm0, %v749_v37, -inf  ;;  %v772_v49 = vsel %vm161_vm0, %v751_v35, -inf  ;;  %v774_v56 = vsel %vm161_vm0, %v753_v42, -inf }
 0x23b   :  { %v762_v46 = vsel %vm161_vm0, %v746_v39, -inf  ;;  %1433 = vmatprep.mubr.msk.f32.mxu1 %vm161_vm0, %v746_v39  ;;  %v763_v47 = vsel %vm161_vm0, %v748_v40, -inf  ;;  %v771_v48 = vmax.f32 %v769_v43, %v770_v44  ;;  %v765_v55 = vsel %vm161_vm0, %v750_v41, -inf }
 0x23c   :  { %v1407_v51 = vpop.f32.mrb[8].mxu1  ;;  %1434 = vmatmul.mubr.msk.f32.vlgmr.msra.gmra.mrb[12].mxu1 %vm161_vm0, %v747_v34  ;;  %v764_v52 = vmax.f32 %v762_v46, %v763_v47  ;;  %v767_v59 = vsel %vm161_vm0, %v752_v45, -inf }
 0x23d   :  { %v604_v53 = vpop.f32.mrb[9].mxu1  ;;  %1436 = vmatprep.mubr.msk.f32.mxu1 %vm161_vm0, %v748_v40  ;;  %v773_v54 = vmax.f32 %v771_v48, %v772_v49 }
 0x23e   :  { %v766_v57 = vmax.f32 %v764_v52, %v765_v55 }
 0x23f   :  { %v775_v58 = vmax.f32 %v773_v54, %v774_v56 }
 0x240   :  { %v1410_v60 = vpop.f32.mrb[10].mxu1  ;;  %1437 = vmatmul.mubr.msk.f32.gmra.mrb[14].mxu1 %vm161_vm0, %v749_v37  ;;  %v768_v61 = vmax.f32 %v766_v57, %v767_v59  ;;  %v1269_v57 = vld [vmem:[%s2029_s8] ss:$0 sm:$0xff] }
 0x241   :  { %v614_v62 = vpop.f32.mrb[11].mxu1  ;;  %1439 = vmatprep.mubr.msk.f32.mxu1 %vm161_vm0, %v750_v41 }
 0x242   :  { %1465 = vmatprep.mubr.msk.f32.mxu0 %vm161_vm0, %v768_v61 }
 0x243   :  { %v1424_v63 = vpop.f32.mrb[22].mxu0  ;;  %1466 = vmatmul.mubr.msk.f32.vlgmr.msra.gmra.mrb[24].mxu0 %vm161_vm0, %v775_v58 }
 0x244   :  { %v729_v0 = vadd.f32 %v1424_v63, %v1248_v19  ;;  %v711_v1 = vpop.f32.mrb[23].mxu0  ;;  %1440 = vmatmul.mubr.msk.f32.gmra.mrb[16].mxu1 %vm161_vm0, %v751_v35 }
 0x245   :  { %v728_v2 = vadd.f32 %v1248_v19, %v711_v1  ;;  %1442 = vmatprep.mubr.msk.f32.mxu1 %vm161_vm0, %v752_v45  ;;  %v1270_v1 = vld [vmem:[%s2030_s9] ss:$0 sm:$0xff] }
 0x246   :  { %v743_v50 = vadd.f32 %v1407_v51, %v729_v0  ;;  %v745_v3 = vadd.f32 %v1410_v60, %v729_v0  ;;  %v739_v4 = vadd.f32 %v1401_v22, %v729_v0  ;;  %v741_v5 = vadd.f32 %v1404_v36, %v729_v0 }
 0x247   :  { %v744_v6 = vadd.f32 %v728_v2, %v614_v62  ;;  %v738_v7 = vadd.f32 %v728_v2, %v584_v25  ;;  %v740_v8 = vadd.f32 %v728_v2, %v594_v38  ;;  %v742_v9 = vadd.f32 %v728_v2, %v604_v53 }
 0x248   :  { %v759_v10 = vmax.f32 %v743_v50, 0.0  ;;  %1443 = vmatmul.mubr.msk.f32.gmra.mrb[18].mxu1 %vm161_vm0, %v753_v42  ;;  %v755_v11 = vmax.f32 %v739_v4, 0.0  ;;  %v757_v12 = vmax.f32 %v741_v5, 0.0  ;;  %v761_v16 = vmax.f32 %v745_v3, 0.0 }
 0x249   :  { %v754_v13 = vmax.f32 %v738_v7, 0.0  ;;  %v756_v14 = vmax.f32 %v740_v8, 0.0  ;;  %v758_v15 = vmax.f32 %v742_v9, 0.0  ;;  %v760_v19 = vmax.f32 %v744_v6, 0.0 }
 0x24a   :  { %v783_v17 = vsel %vm161_vm0, %v755_v11, -inf  ;;  %v784_v18 = vsel %vm161_vm0, %v757_v12, -inf  ;;  %v786_v24 = vsel %vm161_vm0, %v759_v10, -inf  ;;  %v788_v28 = vsel %vm161_vm0, %v761_v16, -inf }
 0x24b   :  { %v776_v20 = vsel %vm161_vm0, %v754_v13, -inf  ;;  %1445 = vmatprep.mubr.msk.f32.mxu1 %vm161_vm0, %v754_v13  ;;  %v777_v21 = vsel %vm161_vm0, %v756_v14, -inf  ;;  %v785_v22 = vmax.f32 %v783_v17, %v784_v18  ;;  %v779_v25 = vsel %vm161_vm0, %v758_v15, -inf }
 0x24c   :  { %1446 = vmatmul.mubr.msk.f32.gmra.mrb[20].mxu1 %vm161_vm0, %v755_v11  ;;  %v778_v23 = vmax.f32 %v776_v20, %v777_v21  ;;  %v781_v29 = vsel %vm161_vm0, %v760_v19, -inf }
 0x24d   :  { %1448 = vmatprep.mubr.msk.f32.mxu1 %vm161_vm0, %v756_v14  ;;  %v787_v26 = vmax.f32 %v785_v22, %v786_v24 }
 0x24e   :  { %v780_v27 = vmax.f32 %v778_v23, %v779_v25 }
 0x24f   :  { %v789_v30 = vmax.f32 %v787_v26, %v788_v28 }
 0x250   :  { %1449 = vmatmul.mubr.msk.f32.gmra.mrb[22].mxu1 %vm161_vm0, %v757_v12  ;;  %v782_v31 = vmax.f32 %v780_v27, %v781_v29 }
 0x251   :  { %1451 = vmatprep.mubr.msk.f32.mxu1 %vm161_vm0, %v758_v15 }
 0x252   :  { %1468 = vmatprep.mubr.msk.f32.mxu0 %vm161_vm0, %v782_v31 }
 0x253   :  { %1469 = vmatmul.mubr.msk.f32.gmra.mrb[26].mxu0 %vm161_vm0, %v789_v30 }
 0x254   :  { %1452 = vmatmul.mubr.msk.f32.gmra.mrb[24].mxu1 %vm161_vm0, %v759_v10 }
 0x255   :  { %1454 = vmatprep.mubr.msk.f32.mxu1 %vm161_vm0, %v760_v19 }
 0x258   :  { %1455 = vmatmul.mubr.msk.f32.gmra.mrb[26].mxu1 %vm161_vm0, %v761_v16 }
 0x30f   :  { %v1435_v32 = vpop.f32.mrb[12].mxu1 }
 0x310   :  { %v913_v33 = vpop.f32.mrb[13].mxu1  ;;  %v1096_v35 = vsel %vm161_vm0, %v1435_v32, -inf }
 0x311   :  { %v1089_v38 = vsel %vm161_vm0, %v913_v33, -inf }
 0x313   :  { %v1438_v34 = vpop.f32.mrb[14].mxu1 }
 0x314   :  { %v1097_v36 = vsel %vm161_vm0, %v1438_v34, -inf  ;;  %v923_v37 = vpop.f32.mrb[15].mxu1 }
 0x315   :  { %v1098_v39 = vmax.f32 %v1096_v35, %v1097_v36  ;;  %v1090_v40 = vsel %vm161_vm0, %v923_v37, -inf }
 0x316   :  { %v1091_v41 = vmax.f32 %v1089_v38, %v1090_v40  ;;  %v1467_v42 = vpop.f32.mrb[24].mxu0  ;;  %v1166_v38 = vlaneseq }
 0x317   :  { %v1441_v43 = vpop.f32.mrb[16].mxu1  ;;  %v1070_v44 = vpop.f32.mrb[25].mxu0 }
 0x318   :  { %v1099_v45 = vsel %vm161_vm0, %v1441_v43, -inf  ;;  %v933_v46 = vpop.f32.mrb[17].mxu1  ;;  %v1167_v40 = vand.u32 127, %v1166_v38  ;;  %v1169_v43 = vshrl.u32 %v1166_v38, 7 }
 0x319   :  { %v1100_v47 = vmax.f32 %v1098_v39, %v1099_v45  ;;  %v1092_v48 = vsel %vm161_vm0, %v933_v46, -inf }
 0x31a   :  { %v1093_v49 = vmax.f32 %v1091_v41, %v1092_v48  ;;  %v1172_v41 = vadd.s32 4294967288, %v1167_v40  ;;  %v1170_v48 = vsub.s32 %v1167_v40, %v1169_v43 }
 0x31b   :  { %v1444_v51 = vpop.f32.mrb[18].mxu1 }
 0x31c   :  { %v1101_v52 = vsel %vm161_vm0, %v1444_v51, -inf  ;;  %v943_v53 = vpop.f32.mrb[19].mxu1  ;;  %v1175_v46 = vsub.s32 %v1172_v41, %v1169_v43 }
 0x31d   :  { %v1102_v54 = vmax.f32 %v1100_v47, %v1101_v52  ;;  %v1094_v55 = vsel %vm161_vm0, %v943_v53, -inf }
 0x31e   :  { %v1095_v56 = vmax.f32 %v1093_v49, %v1094_v55 }
 0x31f   :  { %v1118_v58 = vadd.f32 %v1467_v42, %v1102_v54  ;;  %v1447_v59 = vpop.f32.mrb[20].mxu1 }
 0x320   :  { %v1117_v60 = vadd.f32 %v1095_v56, %v1070_v44  ;;  %v953_v61 = vpop.f32.mrb[21].mxu1  ;;  %v1110_v2 = vsel %vm161_vm0, %v1447_v59, -inf  ;;  %v1157_v44 = vstv %s2031_s10  ;;  %s1656_s10 = scalar_lea.vmem %s1200_s4, 32 }
 0x321   :  { %v1128_v62 = vadd.f32 %v1269_v57, %v1118_v58  ;;  %v1103_v6 = vsel %vm161_vm0, %v953_v61, -inf  ;;  %p1657_p6 = scmp.ne.s32.totalorder %s1200_s4, %s1656_s10  ;;  %p1662_p8 = scmp.lt.s32.totalorder %s1656_s10, %s1656_s10 }
 0x322   :  { %v1127_v63 = vadd.f32 %v1269_v57, %v1117_v60 }
 0x323   :  { %v1450_v0 = vpop.f32.mrb[22].mxu1  ;;  %v1132_v5 = vmax.f32 %v1128_v62, 0.0  ;;  %p1663_p9 = por %p1662_p8, %p1661_p7 }
 0x324   :  { %v1111_v50 = vsel %vm161_vm0, %v1450_v0, -inf  ;;  %v963_v3 = vpop.f32.mrb[23].mxu1  ;;  %v1131_v4 = vmax.f32 %v1127_v63, 0.0 }
 0x325   :  { %v1112_v7 = vmax.f32 %v1110_v2, %v1111_v50  ;;  %v1104_v8 = vsel %vm161_vm0, %v963_v3, -inf  ;;  %v1142_v17 = vmul.f32 %v1270_v1, %v1132_v5  ;;  %p1664_p10 = pnand %p1663_p9, %p1657_p6 }
 0x326   :  { %v1105_v9 = vmax.f32 %v1103_v6, %v1104_v8  ;;  %v1470_v10 = vpop.f32.mrb[26].mxu0  ;;  %v1141_v11 = vmul.f32 %v1270_v1, %v1131_v4 }
 0x327   :  { %v1453_v12 = vpop.f32.mrb[24].mxu1  ;;  %v1080_v13 = vpop.f32.mrb[27].mxu0  ;;  %v1148_v24 = vsel %vm161_vm0, %v1142_v17, 0.0 }
 0x328   :  { %v1113_v14 = vsel %vm161_vm0, %v1453_v12, -inf  ;;  %v973_v15 = vpop.f32.mrb[25].mxu1  ;;  %v1145_v16 = vsel %vm161_vm0, %v1141_v11, 0.0 }
 0x329   :  { %v1114_v18 = vmax.f32 %v1112_v7, %v1113_v14  ;;  %v1106_v19 = vsel %vm161_vm0, %v973_v15, -inf  ;;  %1146 = vadd.xlane.f32.xlu0 %v1145_v16 }
 0x32a   :  { %v1107_v20 = vmax.f32 %v1105_v9, %v1106_v19 }
 0x32b   :  { %v1456_v21 = vpop.f32.mrb[26].mxu1 }
 0x32c   :  { %v1115_v22 = vsel %vm161_vm0, %v1456_v21, -inf  ;;  %v983_v23 = vpop.f32.mrb[27].mxu1 }
 0x32d   :  { %v1116_v25 = vmax.f32 %v1114_v18, %v1115_v22  ;;  %v1108_v26 = vsel %vm161_vm0, %v983_v23, -inf  ;;  %1149 = vadd.xlane.f32.xlu0 %v1148_v24 }
 0x32e   :  { %v1109_v27 = vmax.f32 %v1107_v20, %v1108_v26 }
 0x32f   :  { %v1120_v28 = vadd.f32 %v1470_v10, %v1116_v25 }
 0x330   :  { %v1119_v29 = vadd.f32 %v1109_v27, %v1080_v13 }
 0x331   :  { %v1130_v30 = vadd.f32 %v1269_v57, %v1120_v28 }
 0x332   :  { %v1129_v31 = vadd.f32 %v1269_v57, %v1119_v29 }
 0x333   :  { %v1134_v33 = vmax.f32 %v1130_v30, 0.0 }
 0x334   :  { %v1133_v32 = vmax.f32 %v1129_v31, 0.0 }
 0x335   :  { %v1144_v36 = vmul.f32 %v1270_v1, %v1134_v33 }
 0x336   :  { %v1143_v34 = vmul.f32 %v1270_v1, %v1133_v32 }
 0x337   :  { %v1154_v37 = vsel %vm161_vm0, %v1144_v36, 0.0 }
 0x338   :  { %v1151_v35 = vsel %vm161_vm0, %v1143_v34, 0.0 }
 0x339   :  { %1152 = vadd.xlane.f32.xlu1 %v1151_v35 }
 0x33d   :  { %1155 = vadd.xlane.f32.xlu1 %v1154_v37 }
 0x3b6   :  { %v1147_v39 = vpop.xlane.xlu0 %1146 }
 0x3b7   :  { %v1158_v49 = vadd.f32 %v1157_v44, %v1147_v39 }
 0x3b9   :  { %v1171_v55 = vrot.slane %v1158_v49, %v1170_v48 }
 0x3ba   :  { %v1150_v42 = vpop.xlane.xlu0 %1149 }
 0x3bb   :  { %v1159_v47 = vadd.f32 %v1157_v44, %v1150_v42 }
 0x3bd   :  { %v1176_v53 = vrot.slane %v1159_v47, %v1175_v46 }
 0x3bf   :  { %v1178_v58 = vsel %vm1177_vm1, %v1176_v53, %v1171_v55 }
 0x3c6   :  { %v1153_v45 = vpop.xlane.xlu1 %1152 }
 0x3c7   :  { %v1160_v51 = vadd.f32 %v1157_v44, %v1153_v45 }
 0x3c9   :  { %v1182_v56 = vrot.slane %v1160_v51, %v1170_v48 }
 0x3ca   :  { %v1156_v52 = vpop.xlane.xlu1 %1155 }
 0x3cb   :  { %v1161_v54 = vadd.f32 %v1157_v44, %v1156_v52 }
 0x3cd   :  { %v1186_v57 = vrot.slane %v1161_v54, %v1175_v46 }
 0x3cf   :  { %v1187_v59 = vsel %vm1177_vm1, %v1186_v57, %v1182_v56 }
 0x3d0   :  { %v1189_v60 = vsel %vm1188_vm2, %v1187_v59, %v1178_v58 }
 0x3d1   :  { %1192 = vst.msk [vmem:[#allocation14] sm:$0x3] %vm1191_vm3, %v1189_v60 }
 0x3d2   :  { %1667 = shalt.err (!%p1664_p10)
}
 0x3d3   :  { %s1668_s21 = scalar_lea.hbm %s2032_s11, 32 }
 0x3d4   :  { %p1669_p11 = scmp.ne.s32.totalorder %s2032_s11, %s1668_s21  ;;  %p1672_p12 = scmp.lt.u32.totalorder %s1668_s21, %s2032_s11 }
 0x3d6   :  { %p1674_p13 = pnand %p1672_p12, %p1669_p11 }
 0x3d8   :  { %1677 = shalt.err (!%p1674_p13)
}
 0x3d9   :  { %1202 = dma.vmem_to_hbm [thread:$0]  %s1200_s4, 32, %s2032_s11, [#allocation5]  }
 0x3da   :  { %1686 = dma.done.wait [#allocation5], 32  }
 0x3db   :  { %1687 = vsyncadd [#allocation5], 4294967264 }
 0x3dc   :  { %1206 = vsyncpa [#allocation4], 1 }
 0x3dd   :  { %1207 = vsyncpa [#allocation7], 1 }
 0x3de   :  { %1208 = vsyncpa [#allocation10], 1 }
 0x3df   :  { %1209 = vsyncpa [#allocation13], 1 }
 0x3e0   :  { %1210 = vsyncpa [#allocation5], 1 }

</bundles_post_ra>
